<compile_context>
chip_gen: v5e
topology: v5e:2x2
jax: 0.10.0
libtpu: 0.0.40
codegen_flags: <defaults>
</compile_context>

<pallas_src>
import functools

import jax
import jax.numpy as jnp
import numpy as np
from jax.experimental import pallas as pl
from jax.experimental.pallas import tpu as pltpu


# ----------------------------------------------------------------------------
# Fused Pallas kernel: conv1(stride2, z-cond, ReLU) -> conv2(3x3) -> tanh -> blend
# ----------------------------------------------------------------------------
def fused_layout_kernel(p1_ref, w1_ref, zb_ref, w2_ref, valid_ref, img_ref,
                        b2_ref, mask_ref, heat_ref, *, W, HW):
    """One batch element per grid step; the flattened spatial axis (HW) lives
    in the lane dimension so all stores are lane-dense.

    p1_ref   : (1, Kp, HW)    transposed/zero-padded im2col of img2x (stride-2)
    w1_ref   : (hidden, Kp)   conv1 weights, transposed, K zero-padded
    zb_ref   : (1, hidden, 1) per-batch  z@wz + bz + b1  column
    w2_ref   : (9, hidden)    conv2 tap weights (row = kh*3 + kw)
    valid_ref: (9, HW)        1.0 where a tap's shifted source is in-bounds
    img_ref  : (1, 3, HW)     original image, NCHW-flat
    b2_ref   : (1, 1)         conv2 bias (SMEM scalar)
    mask_ref : (1, 1, HW)
    heat_ref : (1, 3, HW)
    """
    # conv1 as a transposed im2col matmul: (hidden, Kp) @ (Kp, HW) -> (hidden, HW)
    h1 = jnp.dot(w1_ref[...], p1_ref[0], preferred_element_type=jnp.float32)
    h1 = jnp.maximum(h1 + zb_ref[0], 0.0)               # z-cond + bias + ReLU

    # conv2: all 9 taps in one MXU matmul, then shift each tap's row with a
    # lane roll and zero the positions whose 3x3 source falls outside the map.
    taps = jnp.dot(w2_ref[...], h1, preferred_element_type=jnp.float32)  # (9, HW)

    logits = jnp.zeros((1, HW), jnp.float32)
    for k in range(9):
        dh, dw = k // 3 - 1, k % 3 - 1
        d = dh * W + dw                                   # flat source offset
        row = taps[k:k + 1, :]
        if d != 0:
            row = pltpu.roll(row, (-d) % HW, 1)           # row[i] <- taps[k, i+d]
        logits = logits + valid_ref[k:k + 1, :] * row
    logits = logits + b2_ref[0, 0]                        # SMEM scalar bias

    m = jnp.tanh(logits)                                  # (1, HW) in [-1, 1]
    mask_ref[0] = m.astype(mask_ref.dtype)

    # heat = mask.repeat(3ch) * [1,-1,1]; keep img where mask <= -0.95
    heat_rep = jnp.concatenate([m, -m, m], axis=0)        # (3, HW)
    heat_ref[0] = jnp.where(m > -0.95, heat_rep, img_ref[0]).astype(heat_ref.dtype)


# ----------------------------------------------------------------------------
# JAX glue
# ----------------------------------------------------------------------------
def _im2col_t_stride2(x_nchw, H, W):
    """3x3 / stride-2 / pad-1 patches of (N, C, 2H, 2W), channels-first ->
    (N, 9*C, H*W): contraction dim in sublanes, flattened spatial in lanes."""
    N, C = x_nchw.shape[:2]
    xp = jnp.pad(x_nchw, ((0, 0), (0, 0), (1, 1), (1, 1)))
    cols = [xp[:, :, kh:kh + 2 * H:2, kw:kw + 2 * W:2]
            for kh in range(3) for kw in range(3)]
    return jnp.concatenate(cols, axis=1).reshape(N, 9 * C, H * W)


def init_params(key, z_dim, c_in, hidden):
    k1, k2, k3, k4 = jax.random.split(key, 4)
    return {
        "w1": 0.1 * jax.random.normal(k1, (3, 3, c_in, hidden), jnp.float32),
        "b1": jnp.zeros((1, hidden), jnp.float32),
        "wz": 0.1 * jax.random.normal(k2, (z_dim, hidden), jnp.float32),
        "bz": jnp.zeros((1, hidden), jnp.float32),
        "w2": 0.1 * jax.random.normal(k3, (3, 3, hidden, 1), jnp.float32),
        "b2": 0.05 * jax.random.normal(k4, (1, 1), jnp.float32),
    }


def layout_generator_forward(z, img, img2x, params):
    """Mirrors LayoutGenerator.forward.

    z: (N, z_dim); img: (N, 3, H, W); img2x: (N, 3, 2H, 2W)   (NCHW)
    returns (mask: (N, 1, H, W), heat: (N, 3, H, W))
    """
    N, _ = z.shape
    _, C, H, W = img.shape
    assert C == 3, "LayoutGenerator hard-codes a 3-channel heat blend"
    hidden = params["wz"].shape[1]
    HW = H * W
    K1 = 9 * C
    KP1 = ((K1 + 7) // 8) * 8                 # pad contraction dim 27 -> 32

    # conv1 im2col (K in sublanes, HW in lanes); zero-pad K to an 8-multiple.
    p1 = _im2col_t_stride2(img2x, H, W)                          # (N, K1, HW)
    p1 = jnp.pad(p1, ((0, 0), (0, KP1 - K1), (0, 0)))
    w1_t = jnp.pad(params["w1"].reshape(K1, hidden).T,
                   ((0, 0), (0, KP1 - K1)))                      # (hidden, KP1)
    w2_t = params["w2"].reshape(9, hidden)                       # (9, hidden)

    # z-conditioning + conv1 bias folded into one per-batch column (one matmul).
    zb = z @ params["wz"] + params["bz"] + params["b1"]          # (N, hidden)
    zb_t = zb[:, :, None]                                        # (N, hidden, 1)

    # Per-tap boundary-validity masks for the in-kernel 3x3 gather (constants).
    ii = jnp.arange(HW, dtype=jnp.int32)
    hh, ww = ii // W, ii % W
    valid = jnp.stack(
        [((hh + dh >= 0) & (hh + dh < H) & (ww + dw >= 0) & (ww + dw < W))
         for dh in (-1, 0, 1) for dw in (-1, 0, 1)]).astype(jnp.float32)  # (9, HW)

    img_flat = img.reshape(N, C, HW)                             # NCHW-flat
    b2 = params["b2"].reshape(1, 1)

    kernel = functools.partial(fused_layout_kernel, W=W, HW=HW)
    mask_f, heat_f = pl.pallas_call(
        kernel,
        out_shape=(jax.ShapeDtypeStruct((N, 1, HW), jnp.float32),
                   jax.ShapeDtypeStruct((N, C, HW), jnp.float32)),
        grid=(N,),
        in_specs=[
            pl.BlockSpec((1, KP1, HW), lambda n: (n, 0, 0)),
            pl.BlockSpec((hidden, KP1), lambda n: (0, 0)),
            pl.BlockSpec((1, hidden, 1), lambda n: (n, 0, 0)),
            pl.BlockSpec((9, hidden), lambda n: (0, 0)),
            pl.BlockSpec((9, HW), lambda n: (0, 0)),
            pl.BlockSpec((1, C, HW), lambda n: (n, 0, 0)),
            pl.BlockSpec(memory_space=pltpu.MemorySpace.SMEM),
        ],
        out_specs=(
            pl.BlockSpec((1, 1, HW), lambda n: (n, 0, 0)),
            pl.BlockSpec((1, C, HW), lambda n: (n, 0, 0)),
        ),
        compiler_params=pltpu.CompilerParams(
            dimension_semantics=("parallel",),
            vmem_limit_bytes=32 * 1024 * 1024),
    )(p1, w1_t, zb_t, w2_t, valid, img_flat, b2)

    # Outputs are already NCHW-flat; these reshapes are free.
    # TODO(synk): for large H*W, add an HW grid axis with 1-pixel-halo blocks
    # (the fused 3x3 needs neighbors); full-slab-per-batch is fine at these sizes.
    return mask_f.reshape(N, 1, H, W), heat_f.reshape(N, C, H, W)


def reference_forward(z, img, img2x, params):
    """Pure-JAX (XLA conv) reference for the same synthesized CRAFT generator."""
    N, C, H, W = img.shape
    hidden = params["wz"].shape[1]
    w1 = jnp.transpose(params["w1"], (3, 2, 0, 1))       # (hidden, C, 3, 3)
    w2 = jnp.transpose(params["w2"], (3, 2, 0, 1))       # (1, hidden, 3, 3)
    dn = ("NCHW", "OIHW", "NCHW")
    h = jax.lax.conv_general_dilated(img2x, w1, (2, 2), ((1, 1), (1, 1)),
                                     dimension_numbers=dn)
    zb = z @ params["wz"] + params["bz"] + params["b1"]  # (N, hidden)
    h = jnp.maximum(h + zb[:, :, None, None], 0.0)
    logit = jax.lax.conv_general_dilated(h, w2, (1, 1), ((1, 1), (1, 1)),
                                         dimension_numbers=dn)
    mask = jnp.tanh(logit + params["b2"].reshape(1, 1, 1, 1))
    sign = jnp.array([1.0, -1.0, 1.0], jnp.float32).reshape(1, 3, 1, 1)
    heat = jnp.tile(mask, (1, 3, 1, 1)) * sign
    blend = (mask > -0.95).astype(jnp.float32)
    heat = (1.0 - blend) * img + blend * heat
    return mask, heat


if __name__ == "__main__":
    N, C, H, W = 2, 3, 16, 16
    Z_DIM, HIDDEN = 32, 32

    key = jax.random.PRNGKey(0)
    kz, ki, ki2, kp = jax.random.split(key, 4)
    z = jax.random.normal(kz, (N, Z_DIM), jnp.float32)
    img = jax.random.normal(ki, (N, C, H, W), jnp.float32)
    img2x = jax.random.normal(ki2, (N, C, 2 * H, 2 * W), jnp.float32)
    params = init_params(kp, Z_DIM, C, HIDDEN)

    mask, heat = jax.jit(layout_generator_forward)(z, img, img2x, params)
    jax.block_until_ready((mask, heat))
    assert mask.shape == (N, 1, H, W), mask.shape
    assert heat.shape == (N, 3, H, W), heat.shape

    # Conv path vs. an independent XLA-conv reference (loose: MXU precision).
    mask_ref, _ = jax.jit(reference_forward)(z, img, img2x, params)
    np.testing.assert_allclose(np.asarray(mask), np.asarray(mask_ref),
                               rtol=0.0, atol=5e-2)
    # Blend semantics checked exactly against the kernel's own mask.
    heat_exp = jnp.where(mask > -0.95,
                         jnp.concatenate([mask, -mask, mask], axis=1), img)
    np.testing.assert_allclose(np.asarray(heat), np.asarray(heat_exp),
                               rtol=1e-5, atol=1e-5)

    print("KERNEL_OK")
</pallas_src>

<mosaic_0001>
module attributes {stable_mosaic.version = 11 : i64} {
  func.func @fused_layout_kernel(%arg0: i32, %arg1: memref<1x32x256xf32, #tpu.memory_space<vmem>>, %arg2: memref<32x32xf32, #tpu.memory_space<vmem>>, %arg3: memref<1x32x1xf32, #tpu.memory_space<vmem>>, %arg4: memref<9x32xf32, #tpu.memory_space<vmem>>, %arg5: memref<9x256xf32, #tpu.memory_space<vmem>>, %arg6: memref<1x3x256xf32, #tpu.memory_space<vmem>>, %arg7: memref<1x1xf32, #tpu.memory_space<smem>>, %arg8: memref<1x1x256xf32, #tpu.memory_space<vmem>>, %arg9: memref<1x3x256xf32, #tpu.memory_space<vmem>>) attributes {dimension_semantics = [#tpu.dimension_semantics<parallel>], iteration_bounds = array<i64: 2>, scalar_prefetch = 0 : i64, scratch_operands = 0 : i64, tpu.core_type = #tpu.core_type<tc>, window_params = [{transform_indices = @transform_0, window_bounds = array<i64: 1, 32, 256>}, {pipeline_mode = #tpu.pipeline_mode<synchronous>, transform_indices = @transform_1, window_bounds = array<i64: 32, 32>}, {transform_indices = @transform_2, window_bounds = array<i64: 1, 32, 1>}, {pipeline_mode = #tpu.pipeline_mode<synchronous>, transform_indices = @transform_3, window_bounds = array<i64: 9, 32>}, {pipeline_mode = #tpu.pipeline_mode<synchronous>, transform_indices = @transform_4, window_bounds = array<i64: 9, 256>}, {transform_indices = @transform_5, window_bounds = array<i64: 1, 3, 256>}, {transform_indices = @transform_6, window_bounds = array<i64: 1, 1>}, {transform_indices = @transform_7, window_bounds = array<i64: 1, 1, 256>}, {transform_indices = @transform_8, window_bounds = array<i64: 1, 3, 256>}]} {
    %c0 = arith.constant 0 : index
    %c0_0 = arith.constant 0 : index
    %0 = vector.load %arg2[%c0, %c0_0] : memref<32x32xf32, #tpu.memory_space<vmem>>, vector<32x32xf32>
    %c0_1 = arith.constant 0 : index
    %c0_2 = arith.constant 0 : index
    %c0_3 = arith.constant 0 : index
    %1 = vector.load %arg1[%c0_1, %c0_2, %c0_3] : memref<1x32x256xf32, #tpu.memory_space<vmem>>, vector<1x32x256xf32>
    %2 = vector.shape_cast %1 : vector<1x32x256xf32> to vector<32x256xf32>
    %cst = arith.constant dense<0.000000e+00> : vector<32x256xf32>
    %3 = tpu.matmul %0, %2, %cst {dimension_numbers = #tpu.dot_dimension_numbers<[1], [0], [0], [1], [0, 0, 1, 1], [], []>} : vector<32x32xf32>, vector<32x256xf32>, vector<32x256xf32> -> vector<32x256xf32>
    %c0_4 = arith.constant 0 : index
    %c0_5 = arith.constant 0 : index
    %c0_6 = arith.constant 0 : index
    %4 = vector.load %arg3[%c0_4, %c0_5, %c0_6] : memref<1x32x1xf32, #tpu.memory_space<vmem>>, vector<1x32x1xf32>
    %5 = vector.shape_cast %4 : vector<1x32x1xf32> to vector<32x1xf32>
    %6 = vector.broadcast %5 : vector<32x1xf32> to vector<32x256xf32>
    %7 = arith.addf %3, %6 : vector<32x256xf32>
    %cst_7 = arith.constant 0.000000e+00 : f32
    %8 = vector.broadcast %cst_7 : f32 to vector<32x256xf32>
    %9 = arith.maximumf %7, %8 : vector<32x256xf32>
    %c0_8 = arith.constant 0 : index
    %c0_9 = arith.constant 0 : index
    %10 = vector.load %arg4[%c0_8, %c0_9] : memref<9x32xf32, #tpu.memory_space<vmem>>, vector<9x32xf32>
    %cst_10 = arith.constant dense<0.000000e+00> : vector<9x256xf32>
    %11 = tpu.matmul %10, %9, %cst_10 {dimension_numbers = #tpu.dot_dimension_numbers<[1], [0], [0], [1], [0, 0, 1, 1], [], []>} : vector<9x32xf32>, vector<32x256xf32>, vector<9x256xf32> -> vector<9x256xf32>
    %cst_11 = arith.constant 0.000000e+00 : f32
    %12 = vector.broadcast %cst_11 : f32 to vector<1x256xf32>
    %13 = vector.extract_strided_slice %11 {offsets = [0, 0], sizes = [1, 256], strides = [1, 1]} : vector<9x256xf32> to vector<1x256xf32>
    %c17_i32 = arith.constant 17 : i32
    %14 = tpu.dynamic_rotate %13 by %c17_i32 dim 1 : vector<1x256xf32>, i32 -> vector<1x256xf32>
    %c0_12 = arith.constant 0 : index
    %c0_13 = arith.constant 0 : index
    %15 = vector.load %arg5[%c0_12, %c0_13] : memref<9x256xf32, #tpu.memory_space<vmem>>, vector<1x256xf32>
    %16 = arith.mulf %15, %14 : vector<1x256xf32>
    %17 = arith.addf %12, %16 : vector<1x256xf32>
    %18 = vector.extract_strided_slice %11 {offsets = [1, 0], sizes = [1, 256], strides = [1, 1]} : vector<9x256xf32> to vector<1x256xf32>
    %c16_i32 = arith.constant 16 : i32
    %19 = tpu.dynamic_rotate %18 by %c16_i32 dim 1 : vector<1x256xf32>, i32 -> vector<1x256xf32>
    %c1 = arith.constant 1 : index
    %c0_14 = arith.constant 0 : index
    %20 = vector.load %arg5[%c1, %c0_14] : memref<9x256xf32, #tpu.memory_space<vmem>>, vector<1x256xf32>
    %21 = arith.mulf %20, %19 : vector<1x256xf32>
    %22 = arith.addf %17, %21 : vector<1x256xf32>
    %23 = vector.extract_strided_slice %11 {offsets = [2, 0], sizes = [1, 256], strides = [1, 1]} : vector<9x256xf32> to vector<1x256xf32>
    %c15_i32 = arith.constant 15 : i32
    %24 = tpu.dynamic_rotate %23 by %c15_i32 dim 1 : vector<1x256xf32>, i32 -> vector<1x256xf32>
    %c2 = arith.constant 2 : index
    %c0_15 = arith.constant 0 : index
    %25 = vector.load %arg5[%c2, %c0_15] : memref<9x256xf32, #tpu.memory_space<vmem>>, vector<1x256xf32>
    %26 = arith.mulf %25, %24 : vector<1x256xf32>
    %27 = arith.addf %22, %26 : vector<1x256xf32>
    %28 = vector.extract_strided_slice %11 {offsets = [3, 0], sizes = [1, 256], strides = [1, 1]} : vector<9x256xf32> to vector<1x256xf32>
    %c1_i32 = arith.constant 1 : i32
    %29 = tpu.dynamic_rotate %28 by %c1_i32 dim 1 : vector<1x256xf32>, i32 -> vector<1x256xf32>
    %c3 = arith.constant 3 : index
    %c0_16 = arith.constant 0 : index
    %30 = vector.load %arg5[%c3, %c0_16] : memref<9x256xf32, #tpu.memory_space<vmem>>, vector<1x256xf32>
    %31 = arith.mulf %30, %29 : vector<1x256xf32>
    %32 = arith.addf %27, %31 : vector<1x256xf32>
    %33 = vector.extract_strided_slice %11 {offsets = [4, 0], sizes = [1, 256], strides = [1, 1]} : vector<9x256xf32> to vector<1x256xf32>
    %c4 = arith.constant 4 : index
    %c0_17 = arith.constant 0 : index
    %34 = vector.load %arg5[%c4, %c0_17] : memref<9x256xf32, #tpu.memory_space<vmem>>, vector<1x256xf32>
    %35 = arith.mulf %34, %33 : vector<1x256xf32>
    %36 = arith.addf %32, %35 : vector<1x256xf32>
    %37 = vector.extract_strided_slice %11 {offsets = [5, 0], sizes = [1, 256], strides = [1, 1]} : vector<9x256xf32> to vector<1x256xf32>
    %c255_i32 = arith.constant 255 : i32
    %38 = tpu.dynamic_rotate %37 by %c255_i32 dim 1 : vector<1x256xf32>, i32 -> vector<1x256xf32>
    %c5 = arith.constant 5 : index
    %c0_18 = arith.constant 0 : index
    %39 = vector.load %arg5[%c5, %c0_18] : memref<9x256xf32, #tpu.memory_space<vmem>>, vector<1x256xf32>
    %40 = arith.mulf %39, %38 : vector<1x256xf32>
    %41 = arith.addf %36, %40 : vector<1x256xf32>
    %42 = vector.extract_strided_slice %11 {offsets = [6, 0], sizes = [1, 256], strides = [1, 1]} : vector<9x256xf32> to vector<1x256xf32>
    %c241_i32 = arith.constant 241 : i32
    %43 = tpu.dynamic_rotate %42 by %c241_i32 dim 1 : vector<1x256xf32>, i32 -> vector<1x256xf32>
    %c6 = arith.constant 6 : index
    %c0_19 = arith.constant 0 : index
    %44 = vector.load %arg5[%c6, %c0_19] : memref<9x256xf32, #tpu.memory_space<vmem>>, vector<1x256xf32>
    %45 = arith.mulf %44, %43 : vector<1x256xf32>
    %46 = arith.addf %41, %45 : vector<1x256xf32>
    %47 = vector.extract_strided_slice %11 {offsets = [7, 0], sizes = [1, 256], strides = [1, 1]} : vector<9x256xf32> to vector<1x256xf32>
    %c240_i32 = arith.constant 240 : i32
    %48 = tpu.dynamic_rotate %47 by %c240_i32 dim 1 : vector<1x256xf32>, i32 -> vector<1x256xf32>
    %c7 = arith.constant 7 : index
    %c0_20 = arith.constant 0 : index
    %49 = vector.load %arg5[%c7, %c0_20] : memref<9x256xf32, #tpu.memory_space<vmem>>, vector<1x256xf32>
    %50 = arith.mulf %49, %48 : vector<1x256xf32>
    %51 = arith.addf %46, %50 : vector<1x256xf32>
    %52 = vector.extract_strided_slice %11 {offsets = [8, 0], sizes = [1, 256], strides = [1, 1]} : vector<9x256xf32> to vector<1x256xf32>
    %c239_i32 = arith.constant 239 : i32
    %53 = tpu.dynamic_rotate %52 by %c239_i32 dim 1 : vector<1x256xf32>, i32 -> vector<1x256xf32>
    %c8 = arith.constant 8 : index
    %c0_21 = arith.constant 0 : index
    %54 = vector.load %arg5[%c8, %c0_21] : memref<9x256xf32, #tpu.memory_space<vmem>>, vector<1x256xf32>
    %55 = arith.mulf %54, %53 : vector<1x256xf32>
    %56 = arith.addf %51, %55 : vector<1x256xf32>
    %c0_22 = arith.constant 0 : index
    %c0_23 = arith.constant 0 : index
    %57 = memref.load %arg7[%c0_22, %c0_23] : memref<1x1xf32, #tpu.memory_space<smem>>
    %58 = vector.broadcast %57 : f32 to vector<1x256xf32>
    %59 = arith.addf %56, %58 : vector<1x256xf32>
    %60 = math.tanh %59 : vector<1x256xf32>
    %c0_24 = arith.constant 0 : index
    %c0_25 = arith.constant 0 : index
    %c0_26 = arith.constant 0 : index
    %61 = vector.load %arg8[%c0_24, %c0_25, %c0_26] : memref<1x1x256xf32, #tpu.memory_space<vmem>>, vector<1x1x256xf32>
    %62 = vector.shape_cast %61 : vector<1x1x256xf32> to vector<1x256xf32>
    %63 = vector.shape_cast %60 : vector<1x256xf32> to vector<1x1x256xf32>
    tpu.vector_store %arg8[%c0_24, %c0_25, %c0_26], %63 {strides = array<i32>} : memref<1x1x256xf32, #tpu.memory_space<vmem>>, vector<1x1x256xf32>,
    %cst_27 = arith.constant 0.000000e+00 : f32
    %64 = vector.broadcast %cst_27 : f32 to vector<1x256xf32>
    %65 = arith.subf %64, %60 : vector<1x256xf32>
    %66 = tpu.concatenate %60, %65, %60 in 0 : vector<1x256xf32>, vector<1x256xf32>, vector<1x256xf32> -> vector<3x256xf32>
    %cst_28 = arith.constant -0.949999988 : f32
    %67 = vector.broadcast %cst_28 : f32 to vector<1x256xf32>
    %68 = arith.cmpf ogt, %60, %67 : vector<1x256xf32>
    %c0_29 = arith.constant 0 : index
    %c0_30 = arith.constant 0 : index
    %c0_31 = arith.constant 0 : index
    %69 = vector.load %arg6[%c0_29, %c0_30, %c0_31] : memref<1x3x256xf32, #tpu.memory_space<vmem>>, vector<1x3x256xf32>
    %70 = vector.shape_cast %69 : vector<1x3x256xf32> to vector<3x256xf32>
    %71 = vector.shape_cast %68 : vector<1x256xi1> to vector<1x256xi1>
    %72 = vector.broadcast %71 : vector<1x256xi1> to vector<3x256xi1>
    %73 = arith.select %72, %66, %70 : vector<3x256xi1>, vector<3x256xf32>
    %c0_32 = arith.constant 0 : index
    %c0_33 = arith.constant 0 : index
    %c0_34 = arith.constant 0 : index
    %74 = vector.load %arg9[%c0_32, %c0_33, %c0_34] : memref<1x3x256xf32, #tpu.memory_space<vmem>>, vector<1x3x256xf32>
    %75 = vector.shape_cast %74 : vector<1x3x256xf32> to vector<3x256xf32>
    %76 = vector.shape_cast %73 : vector<3x256xf32> to vector<1x3x256xf32>
    tpu.vector_store %arg9[%c0_32, %c0_33, %c0_34], %76 {strides = array<i32>} : memref<1x3x256xf32, #tpu.memory_space<vmem>>, vector<1x3x256xf32>,
    return
  }
  func.func @transform_0(%arg0: i32) -> (i32, i32, i32) {
    %c0_i32 = arith.constant 0 : i32
    %c0_i32_0 = arith.constant 0 : i32
    %c0_i32_1 = arith.constant 0 : i32
    return %arg0, %c0_i32, %c0_i32_0 : i32, i32, i32
  }
  func.func @transform_1(%arg0: i32) -> (i32, i32) {
    %c0_i32 = arith.constant 0 : i32
    %c0_i32_0 = arith.constant 0 : i32
    %c0_i32_1 = arith.constant 0 : i32
    return %c0_i32, %c0_i32_0 : i32, i32
  }
  func.func @transform_2(%arg0: i32) -> (i32, i32, i32) {
    %c0_i32 = arith.constant 0 : i32
    %c0_i32_0 = arith.constant 0 : i32
    %c0_i32_1 = arith.constant 0 : i32
    return %arg0, %c0_i32, %c0_i32_0 : i32, i32, i32
  }
  func.func @transform_3(%arg0: i32) -> (i32, i32) {
    %c0_i32 = arith.constant 0 : i32
    %c0_i32_0 = arith.constant 0 : i32
    %c0_i32_1 = arith.constant 0 : i32
    return %c0_i32, %c0_i32_0 : i32, i32
  }
  func.func @transform_4(%arg0: i32) -> (i32, i32) {
    %c0_i32 = arith.constant 0 : i32
    %c0_i32_0 = arith.constant 0 : i32
    %c0_i32_1 = arith.constant 0 : i32
    return %c0_i32, %c0_i32_0 : i32, i32
  }
  func.func @transform_5(%arg0: i32) -> (i32, i32, i32) {
    %c0_i32 = arith.constant 0 : i32
    %c0_i32_0 = arith.constant 0 : i32
    %c0_i32_1 = arith.constant 0 : i32
    return %arg0, %c0_i32, %c0_i32_0 : i32, i32, i32
  }
  func.func @transform_6(%arg0: i32) -> (i32, i32) {
    %c0_i32 = arith.constant 0 : i32
    %c0_i32_0 = arith.constant 0 : i32
    %c0_i32_1 = arith.constant 0 : i32
    return %c0_i32, %c0_i32_0 : i32, i32
  }
  func.func @transform_7(%arg0: i32) -> (i32, i32, i32) {
    %c0_i32 = arith.constant 0 : i32
    %c0_i32_0 = arith.constant 0 : i32
    %c0_i32_1 = arith.constant 0 : i32
    return %arg0, %c0_i32, %c0_i32_0 : i32, i32, i32
  }
  func.func @transform_8(%arg0: i32) -> (i32, i32, i32) {
    %c0_i32 = arith.constant 0 : i32
    %c0_i32_0 = arith.constant 0 : i32
    %c0_i32_1 = arith.constant 0 : i32
    return %arg0, %c0_i32, %c0_i32_0 : i32, i32, i32
  }
}

</mosaic_0001>

<bundles_post_ra>
// kernel: layout_generator_forward.1
= control target key start
LH: loop header
LB: loop body
LE: loop exit
PB: predicated region body
PF: predicated region fallthrough
CT: control target
= control target key end

     0   :  { %s983_s29 = smov 0   ;;  %s1124_s0 = inlined_call_operand.vmem [shape: f32[2,32,256], index: 0, kind: input, shape index: {}]   ;;  %s1125_s1 = inlined_call_operand.vmem [shape: f32[32,32], index: 1, kind: input, shape index: {}]   ;;  %s1126_s2 = inlined_call_operand.vmem [shape: f32[2,32,1], index: 2, kind: input, shape index: {}]   ;;  %s1127_s3 = inlined_call_operand.vmem [shape: f32[9,32], index: 3, kind: input, shape index: {}]   ;;  %s1128_s4 = inlined_call_operand.vmem [shape: f32[9,256], index: 4, kind: input, shape index: {}]   ;;  %s1129_s5 = inlined_call_operand.vmem [shape: f32[2,3,256], index: 5, kind: input, shape index: {}]   ;;  %s1130_s6 = inlined_call_operand.<no memory space> [shape: f32[1,1], index: 6, kind: input, shape index: {}]   ;;  %s1131_s7 = inlined_call_operand.vmem [shape: f32[2,1,256], index: 7, kind: output, shape index: {0}]   ;;  %s1132_s8 = inlined_call_operand.vmem [shape: f32[2,3,256], index: 8, kind: output, shape index: {1}]  }
   0x1   :  { %14 = sst [smem:[#allocation2]] %s1130_s6 }
   0x2 LB: > { %s849_s30 = sadd.s32 4294967295, %s924_s29   ;;  %p853_p0 = scmp.ge.s32.totalorder %s924_s29, 1  ;;  %s924_s29 = sphi %s983_s29, %s20_s29  }
   0x3   : > { %p286_p1 = scmp.lt.s32.totalorder %s924_s29, 3 }
   0x5   : > { %p287_p2 = pnand %p853_p0, %p286_p1 }
   0x6   : > { %p334_p3 = scmp.lt.s32.totalorder (!%p287_p2), %s849_s30, 1  ;;  %s927_s28 = smov (!%p287_p2), 17  }
   0x7   : > { %290 = sbr.rel (%p287_p2) target bundleno = 484 (0x1e4), region = 48  ;;  %s928_s9 = smov (!%p287_p2), 16  }
   0x8   : > { %s929_s13 = smov (!%p287_p2), 15   ;;  %s930_s14 = smov (!%p287_p2), 1  }
   0x9   : > { %s931_s15 = smov (!%p287_p2), 127   ;;  %s932_s16 = smov (!%p287_p2), 113  }
   0xa   : > { %s934_s18 = smov (!%p287_p2), 111  }
   0xc   : > { %v926_v0 = vmov 0   ;;  %s1134_s30 = smov (!%p334_p3, %s849_s30), 1  ;;  %v358_v9 = vld [vmem:[%s1125_s1] sm:$0xff]  ;;  %vm394_vm0 = vcmask 261120   ;;  %v361_v10 = vld [vmem:[%s1125_s1 + $0x18] sm:$0xff]  ;;  %v359_v13 = vld [vmem:[%s1125_s1 + $0x8] sm:$0xff] }
   0xd   : > { %915 = vset.pattern.permute.xlu1 %v926_v0  ;;  %914 = vset.pattern.permute.xlu0 %v926_v0  ;;  %s885_s6 = sshll.u32 %s1134_s30, 6  ;;  %s886_s12 = sshll.u32 %s1134_s30, 5  ;;  %v360_v16 = vld [vmem:[%s1125_s1 + $0x10] sm:$0xff]  ;;  %v473_v44 = vld [vmem:[%s1127_s3] sm:$0xff]  ;;  %v474_v46 = vld [vmem:[%s1127_s3 + $0x8] sm:$0x1] }
   0xe   : > { %s338_s11 = scalar_lea.vmem %s1124_s0, %s885_s6  ;;  %s343_s17 = scalar_lea.vmem %s1126_s2, %s886_s12  ;;  %vm540_vm5 = vcmask 1040384   ;;  %vm714_vm11 = vcmask 1041408   ;;  %vm735_vm15 = vcmask 1043456  }
   0xf   : > { %v368_v1 = vld [vmem:[%s338_s11 + $0x30] sm:$0xff]  ;;  %v369_v2 = vld [vmem:[%s338_s11 + $0x38] sm:$0xff]  ;;  %v366_v3 = vld [vmem:[%s338_s11 + $0x20] sm:$0xff]  ;;  %s887_s6 = sshll.u32 %s1134_s30, 3 }
  0x10   : > { %419 = vmatpush.msra.mxu0 %v368_v1  ;;  %448 = vmatpush.msra.mxu1 %v369_v2  ;;  %v367_v4 = vld [vmem:[%s338_s11 + $0x28] sm:$0xff]  ;;  %v364_v5 = vld [vmem:[%s338_s11 + $0x10] sm:$0xff]  ;;  %v365_v6 = vld [vmem:[%s338_s11 + $0x18] sm:$0xff]  ;;  %s348_s12 = scalar_lea.vmem %s1129_s5, %s887_s6  ;;  %s357_s24 = scalar_lea.vmem %s1132_s8, %s887_s6 }
  0x11   : > { %889 = vmatpush.msra.mxu2 %v368_v1  ;;  %893 = vmatpush.msra.mxu3 %v369_v2  ;;  %v362_v7 = vld [vmem:[%s338_s11] sm:$0xff]  ;;  %v363_v8 = vld [vmem:[%s338_s11 + $0x8] sm:$0xff]  ;;  %v373_v12 = vld [vmem:[%s343_s17 + $0x18] sm:$0xff] }
  0x12   : > { %420 = vmatpush.msra.mxu0 %v366_v3  ;;  %449 = vmatpush.msra.mxu1 %v367_v4  ;;  %v371_v11 = vld [vmem:[%s343_s17 + $0x8] sm:$0xff]  ;;  %v370_v14 = vld [vmem:[%s343_s17] sm:$0xff]  ;;  %v372_v15 = vld [vmem:[%s343_s17 + $0x10] sm:$0xff]  ;;  %s933_s17 = smov 112  }
  0x13   : > { %890 = vmatpush.msra.mxu2 %v366_v3  ;;  %894 = vmatpush.msra.mxu3 %v367_v4  ;;  %v718_v51 = vld [vmem:[%s348_s12] sm:$0x77] }
  0x14   : > { %421 = vmatpush.msra.mxu0 %v364_v5  ;;  %450 = vmatpush.msra.mxu1 %v365_v6 }
  0x15   : > { %891 = vmatpush.msra.mxu2 %v364_v5  ;;  %895 = vmatpush.msra.mxu3 %v365_v6  ;;  %v531_v5 = vlaneseq }
  0x16   : > { %422 = vmatpush.msra.mxu0 %v362_v7  ;;  %451 = vmatpush.msra.mxu1 %v363_v8 }
  0x17   : > { %863 = vmatmul.msk.f32.vlgmr.msra.gmra.mxu0 %vm394_vm0, %v358_v9  ;;  %867 = vmatmul.msk.f32.vlgmr.msra.gmra.mxu1 %vm394_vm0, %v358_v9  ;;  %vm698_vm10 = vcmp.lt.s32.totalorder %v531_v5, 256 }
  0x18   : > { %892 = vmatpush.msra.mxu2 %v362_v7  ;;  %896 = vmatpush.msra.mxu3 %v363_v8  ;;  %v1042_v7 = vand.u32 127, %v531_v5 }
  0x19   : > { %866 = vmatmul.msk.f32.vlgmr.msra.gmra.mxu2 %vm394_vm0, %v361_v10  ;;  %870 = vmatmul.msk.f32.vlgmr.msra.gmra.mxu3 %vm394_vm0, %v361_v10 }
  0x1a   : > { %381 = vperm.xlu1 %915, %v371_v11   ;;  %391 = vperm.xlu0 %914, %v373_v12   ;;  %vm555_vm1 = vcmp.lt.s32.totalorder %v1042_v7, 16  ;;  %vm533_vm2 = vcmp.lt.s32.totalorder %v1042_v7, 17  ;;  %vm575_vm3 = vcmp.lt.s32.totalorder %v1042_v7, 15  ;;  %vm595_vm4 = vcmp.lt.s32.totalorder %v1042_v7, 1 }
  0x1b   : > { %vm624_vm6 = vcmp.lt.s32.totalorder %v1042_v7, 127  ;;  %vm644_vm7 = vcmp.lt.s32.totalorder %v1042_v7, 113  ;;  %vm664_vm8 = vcmp.lt.s32.totalorder %v1042_v7, 112  ;;  %vm680_vm9 = vcmp.lt.s32.totalorder %v1042_v7, 111 }
  0x1f   : > { %864 = vmatmul.msk.f32.gmra.mxu0 %vm394_vm0, %v359_v13  ;;  %868 = vmatmul.msk.f32.gmra.mxu1 %vm394_vm0, %v359_v13 }
  0x22   : > { %376 = vperm.xlu1 %915, %v370_v14   ;;  %386 = vperm.xlu0 %914, %v372_v15  }
  0x27   : > { %865 = vmatmul.msk.f32.gmra.mxu0 %vm394_vm0, %v360_v16  ;;  %869 = vmatmul.msk.f32.gmra.mxu1 %vm394_vm0, %v360_v16 }
  0x8c   : > { %v382_v19 = vpop.permute.xlu1 %381  ;;  %v392_v20 = vpop.permute.xlu0 %391 }
  0x94   : > { %v424_v17 = vpop.f32.mrf.mxu0  ;;  %v453_v18 = vpop.f32.mrf.mxu1 }
  0x95   : > { %v377_v29 = vpop.permute.xlu1 %376  ;;  %v387_v30 = vpop.permute.xlu0 %386 }
  0x96   : > { %v425_v37 = vadd.f32 %v424_v17, %v377_v29  ;;  %v454_v39 = vadd.f32 %v453_v18, %v377_v29 }
  0x98   : > { %v465_v43 = vmax.f32 %v425_v37, 0.0  ;;  %v466_v45 = vmax.f32 %v454_v39, 0.0 }
  0x9c   : > { %v427_v21 = vpop.f32.mrf.mxu0  ;;  %v433_v22 = vpop.f32.mrf.mxu2 }
  0x9d   : > { %v434_v23 = vadd.f32 %v433_v22, %v392_v20  ;;  %v456_v24 = vpop.f32.mrf.mxu1  ;;  %v462_v25 = vpop.f32.mrf.mxu3  ;;  %v428_v32 = vadd.f32 %v427_v21, %v382_v19  ;;  %v536_v21 = vld [vmem:[%s1128_s4] ss:$8 sm:$0x3] }
  0x9e   : > { %v463_v26 = vadd.f32 %v462_v25, %v392_v20  ;;  %v457_v35 = vadd.f32 %v456_v24, %v382_v19  ;;  %v875_v19 = vld [vmem:[%s1128_s4 + $0x1] ss:$8 sm:$0x3] }
  0x9f   : > { %v471_v27 = vmax.f32 %v434_v23, 0.0  ;;  %v467_v41 = vmax.f32 %v428_v32, 0.0 }
  0xa0   : > { %v472_v28 = vmax.f32 %v463_v26, 0.0  ;;  %v468_v42 = vmax.f32 %v457_v35, 0.0 }
  0xa1   : > { %493 = vmatpush.msrb.mxu2 %v471_v27  ;;  %v876_v27 = vld [vmem:[%s1128_s4 + $0x2] ss:$8 sm:$0x3] }
  0xa2   : > { %516 = vmatpush.msrb.mxu3 %v472_v28 }
  0xa4   : > { %v430_v31 = vpop.f32.mrf.mxu0 }
  0xa5   : > { %v431_v33 = vadd.f32 %v430_v31, %v387_v30  ;;  %v459_v34 = vpop.f32.mrf.mxu1 }
  0xa6   : > { %v460_v36 = vadd.f32 %v459_v34, %v387_v30 }
  0xa7   : > { %v469_v38 = vmax.f32 %v431_v33, 0.0 }
  0xa8   : > { %v470_v40 = vmax.f32 %v460_v36, 0.0 }
  0xa9   : > { %494 = vmatpush.msrb.mxu2 %v469_v38  ;;  %v877_v38 = vld [vmem:[%s1128_s4 + $0x3] ss:$8 sm:$0x3] }
  0xaa   : > { %517 = vmatpush.msrb.mxu3 %v470_v40 }
  0xab   : > { %495 = vmatpush.msrb.mxu2 %v467_v41 }
  0xac   : > { %518 = vmatpush.msrb.mxu3 %v468_v42 }
  0xad   : > { %496 = vmatpush.msrb.mxu2 %v465_v43 }
  0xae   : > { %519 = vmatpush.msrb.mxu3 %v466_v45  ;;  %871 = vmatmul.msk.f32.vlgmr.msrb.gmra.mxu2 %vm394_vm0, %v473_v44 }
  0xaf   : > { %873 = vmatmul.msk.f32.vlgmr.msrb.gmra.mxu3 %vm394_vm0, %v473_v44 }
  0xb6   : > { %872 = vmatmul.msk.f32.gmra.mxu2 %vm394_vm0, %v474_v46 }
  0xb7   : > { %874 = vmatmul.msk.f32.gmra.mxu3 %vm394_vm0, %v474_v46  ;;  %v878_v46 = vld [vmem:[%s1128_s4 + $0x4] ss:$8 sm:$0x3] }
 0x131   : > { %v498_v47 = vpop.f32.mrf.mxu2 }
 0x132   : > { %609 = vst [vmem:[#allocation1] sm:$0xff] %v498_v47  ;;  %v521_v48 = vpop.f32.mrf.mxu3  ;;  %527 = vrot.lane.b32.xlu2 %v498_v47, %s927_s28  ;;  %v547_v49 = vrot.slane %v498_v47, 1  ;;  %v587_v54 = vrot.slane %v498_v47, 3  ;;  %v567_v55 = vrot.slane %v498_v47, 2  ;;  %v616_v56 = vrot.slane %v498_v47, 5 }
 0x133   : > { %610 = vst [vmem:[#allocation1 + $0x9] sm:$0xff] %v521_v48  ;;  %v548_v50 = vrot.slane %v521_v48, 1  ;;  %v568_v52 = vrot.slane %v521_v48, 2  ;;  %v617_v57 = vrot.slane %v521_v48, 5  ;;  %v588_v58 = vrot.slane %v521_v48, 3 }
 0x134   : > { %551 = vrot.lane.b32.xlu0 %v547_v49, %s928_s9  ;;  %v637_v59 = vrot.slane %v521_v48, 6  ;;  %v656_v60 = vrot.slane %v498_v47, 7  ;;  %v636_v61 = vrot.slane %v498_v47, 6  ;;  %v657_v1 = vrot.slane %v521_v48, 7 }
 0x135   : > { %553 = vrot.lane.b32.xlu1 %v548_v50, %s928_s9  ;;  %v879_v47 = vld [vmem:[%s1128_s4 + $0x5] ss:$8 sm:$0x3] }
 0x139   : > { %v501_v62 = vpop.f32.mrf.mxu2 }
 0x13a   : > { %529 = vrot.lane.b32.xlu2 %v521_v48, %s927_s28  ;;  %v1039_v53 = vld [vmem:[#allocation1 + $0x4] ss:$9 sm:$0xff]  ;;  %v524_v63 = vpop.f32.mrf.mxu3 }
 0x13b   : > { %725 = vst [vmem:[#allocation1] ss:$2 sm:$0xff] %v718_v51 }
 0x13c   : > { %573 = vrot.lane.b32.xlu0 %v568_v52, %s929_s13 }
 0x13d   : > { %591 = vrot.lane.b32.xlu1 %v587_v54, %s930_s14 }
 0x142   : > { %571 = vrot.lane.b32.xlu2 %v567_v55, %s929_s13  ;;  %v880_v55 = vld [vmem:[%s1128_s4 + $0x6] ss:$8 sm:$0x3]  ;;  %s692_s13 = sld [smem:[#allocation2]] }
 0x144   : > { %620 = vrot.lane.b32.xlu0 %v616_v56, %s931_s15 }
 0x145   : > { %622 = vrot.lane.b32.xlu1 %v617_v57, %s931_s15  ;;  %v614_v57 = vmul.f32 %v878_v46, %v1039_v53 }
 0x14a   : > { %593 = vrot.lane.b32.xlu2 %v588_v58, %s930_s14 }
 0x14c   : > { %642 = vrot.lane.b32.xlu0 %v637_v59, %s932_s16 }
 0x14d   : > { %660 = vrot.lane.b32.xlu1 %v656_v60, %s933_s17 }
 0x152   : > { %640 = vrot.lane.b32.xlu2 %v636_v61, %s932_s16 }
 0x154   : > { %676 = vrot.lane.b32.xlu0 %v501_v62, %s934_s18 }
 0x155   : > { %678 = vrot.lane.b32.xlu1 %v524_v63, %s934_s18  ;;  %s860_s18 = sshll.u32 %s1134_s30, 1 }
 0x156   : > { %s352_s21 = scalar_lea.vmem %s1131_s7, %s860_s18 }
 0x15a   : > { %662 = vrot.lane.b32.xlu2 %v657_v1, %s933_s17 }
 0x18c   : > { %v528_v2 = vpop.permute.xlu2 %527 }
 0x194   : > { %v530_v3 = vpop.permute.xlu2 %529 }
 0x195   : > { %v534_v11 = vsel %vm533_vm2, %v528_v2, %v530_v3  ;;  %v535_v22 = vsel %vm533_vm2, %v530_v3, %v528_v2  ;;  %v881_v3 = vld [vmem:[%s1128_s4 + $0x7] ss:$8 sm:$0x3] }
 0x196   : > { %v539_v16 = vrot.slane %v534_v11, 7 }
 0x198   : > { %v541_v25 = vsel %vm540_vm5, %v535_v22, %v539_v16 }
 0x199   : > { %v543_v33 = vmul.f32 %v541_v25, %v536_v21 }
 0x19c   : > { %v572_v4 = vpop.permute.xlu2 %571 }
 0x1a4   : > { %v594_v9 = vpop.permute.xlu2 %593 }
 0x1a6   : > { %v552_v6 = vpop.permute.xlu0 %551 }
 0x1a7   : > { %v554_v8 = vpop.permute.xlu1 %553 }
 0x1a8   : > { %v556_v10 = vsel %vm555_vm1, %v552_v6, %v554_v8  ;;  %v557_v18 = vsel %vm555_vm1, %v554_v8, %v552_v6 }
 0x1a9   : > { %v562_v13 = vrot.slane %v556_v10, 7 }
 0x1ab   : > { %v563_v20 = vsel %vm540_vm5, %v557_v18, %v562_v13 }
 0x1ac   : > { %v641_v26 = vpop.permute.xlu2 %640  ;;  %v565_v29 = vmul.f32 %v875_v19, %v563_v20 }
 0x1ae   : > { %v574_v12 = vpop.permute.xlu0 %573  ;;  %v566_v36 = vadd.f32 %v565_v29, %v543_v33  ;;  %v727_v29 = vld.sshfl [vmem:[#allocation1 + $0x8] sm:$0xff pattern:$0x75316420] }
 0x1af   : > { %v592_v14 = vpop.permute.xlu1 %591  ;;  %v576_v15 = vsel %vm575_vm3, %v572_v4, %v574_v12  ;;  %v577_v24 = vsel %vm575_vm3, %v574_v12, %v572_v4 }
 0x1b0   : > { %v582_v17 = vrot.slane %v576_v15, 7  ;;  %v596_v23 = vsel %vm595_vm4, %v592_v14, %v594_v9  ;;  %v597_v37 = vsel %vm595_vm4, %v594_v9, %v592_v14  ;;  %v882_v9 = vld [vmem:[%s1128_s4 + $0x10] ss:$8 sm:$0x3]  ;;  %v693_v15 = vstv %s692_s13 }
 0x1b1   : > { %v602_v31 = vrot.slane %v596_v23, 7 }
 0x1b2   : > { %v583_v28 = vsel %vm540_vm5, %v577_v24, %v582_v17 }
 0x1b3   : > { %v585_v34 = vmul.f32 %v876_v27, %v583_v28  ;;  %v603_v39 = vsel %vm540_vm5, %v597_v37, %v602_v31 }
 0x1b4   : > { %v605_v42 = vmul.f32 %v877_v38, %v603_v39  ;;  %v663_v45 = vpop.permute.xlu2 %662 }
 0x1b5   : > { %v586_v41 = vadd.f32 %v585_v34, %v566_v36 }
 0x1b6   : > { %v621_v30 = vpop.permute.xlu0 %620 }
 0x1b7   : > { %v623_v32 = vpop.permute.xlu1 %622  ;;  %v606_v51 = vadd.f32 %v605_v42, %v586_v41 }
 0x1b8   : > { %v626_v35 = vsel %vm624_vm6, %v623_v32, %v621_v30  ;;  %v625_v43 = vsel %vm624_vm6, %v621_v30, %v623_v32  ;;  %v726_v32 = vld.sshfl [vmem:[#allocation1] sm:$0xff pattern:$0x75316420] }
 0x1b9   : > { %v631_v40 = vrot.slane %v626_v35, 7  ;;  %v615_v61 = vadd.f32 %v614_v57, %v606_v51 }
 0x1bb   : > { %v632_v48 = vsel %vm540_vm5, %v625_v43, %v631_v40 }
 0x1bc   : > { %v634_v58 = vmul.f32 %v879_v47, %v632_v48 }
 0x1be   : > { %v643_v44 = vpop.permute.xlu0 %642  ;;  %v635_v63 = vadd.f32 %v634_v58, %v615_v61 }
 0x1bf   : > { %v661_v49 = vpop.permute.xlu1 %660  ;;  %v646_v50 = vsel %vm644_vm7, %v643_v44, %v641_v26  ;;  %v645_v56 = vsel %vm644_vm7, %v641_v26, %v643_v44 }
 0x1c0   : > { %v666_v52 = vsel %vm664_vm8, %v663_v45, %v661_v49  ;;  %v651_v54 = vrot.slane %v646_v50, 7  ;;  %v665_v1 = vsel %vm664_vm8, %v661_v49, %v663_v45 }
 0x1c1   : > { %v671_v60 = vrot.slane %v666_v52, 7 }
 0x1c2   : > { %v652_v59 = vsel %vm540_vm5, %v645_v56, %v651_v54 }
 0x1c3   : > { %v654_v62 = vmul.f32 %v880_v55, %v652_v59  ;;  %v672_v53 = vsel %vm540_vm5, %v665_v1, %v671_v60 }
 0x1c4   : > { %v674_v11 = vmul.f32 %v881_v3, %v672_v53 }
 0x1c5   : > { %v655_v6 = vadd.f32 %v654_v62, %v635_v63 }
 0x1c6   : > { %v677_v2 = vpop.permute.xlu0 %676 }
 0x1c7   : > { %v679_v4 = vpop.permute.xlu1 %678  ;;  %v675_v13 = vadd.f32 %v674_v11, %v655_v6 }
 0x1c8   : > { %v682_v8 = vsel %vm680_vm9, %v679_v4, %v677_v2  ;;  %v681_v12 = vsel %vm680_vm9, %v677_v2, %v679_v4 }
 0x1c9   : > { %v687_v10 = vrot.slane %v682_v8, 7 }
 0x1cb   : > { %v688_v7 = vsel %vm540_vm5, %v681_v12, %v687_v10 }
 0x1cc   : > { %v690_v14 = vmul.f32 %v882_v9, %v688_v7 }
 0x1ce   : > { %v691_v16 = vadd.f32 %v690_v14, %v675_v13 }
 0x1d0   : > { %v694_v17 = vadd.f32 %v693_v15, %v691_v16 }
 0x1d2   : > { %916 = vtanh.f32 %v694_v17 }
 0x1d8   : > { %v917_v18 = vpop.eup %916 }
 0x1d9   : > { %700 = vst.msk [vmem:[%s352_s21] sm:$0x3] %vm698_vm10, %v917_v18  ;;  %v701_v19 = vsub.f32 0.0, %v917_v18  ;;  %v703_v20 = vperm.slane %v917_v18, 0  ;;  %vm717_vm12 = vcmp.gt.f32.partialorder %v917_v18, -0.95 }
 0x1da   : > { %v704_v21 = vperm.slane %v917_v18, 1  ;;  %v719_v24 = vsel %vm717_vm12, 1, %v926_v0 }
 0x1db   : > { %v708_v22 = vperm.slane %v701_v19, 0  ;;  %v709_v23 = vperm.slane %v701_v19, 1  ;;  %v720_v25 = vperm.slane %v719_v24, 0  ;;  %v721_v26 = vperm.slane %v719_v24, 1 }
 0x1dd   : > { %v712_v27 = vsel %vm540_vm5, %v703_v20, %v708_v22  ;;  %v713_v28 = vsel %vm540_vm5, %v704_v21, %v709_v23  ;;  %vm722_vm13 = vcmp.eq.s32.totalorder %v720_v25, 1  ;;  %vm723_vm14 = vcmp.eq.s32.totalorder %v721_v26, 1 }
 0x1de   : > { %v715_v5 = vsel %vm714_vm11, %v712_v27, %v703_v20  ;;  %v716_v30 = vsel %vm714_vm11, %v713_v28, %v704_v21 }
 0x1df   : > { %v731_v31 = vsel %vm723_vm14, %v716_v30, %v727_v29  ;;  %v730_v33 = vsel %vm722_vm13, %v715_v5, %v726_v32 }
 0x1e0   : > { %v734_v0 = vrot.slane %v731_v31, 4 }
 0x1e2   : > { %v736_v34 = vsel %vm735_vm15, %v730_v33, %v734_v0 }
 0x1e3   : > { %738 = vst [vmem:[%s357_s24] sm:$0x77] %v736_v34 }
 0x1e4 PF: > { %s20_s29 = sadd.s32 1, %s924_s29  }
 0x1e5   : > { %p17_p4 = scmp.ge.s32.totalorder %s20_s29, 4  }
 0x1e7   :  { %19 = sbr.rel (!%p17_p4) target bundleno = 2 (0x2), region = 105 }

</bundles_post_ra>
